<compile_context>
chip_gen: v5e
topology: v5e:2x2
jax: 0.10.0
libtpu: 0.0.40
codegen_flags: <defaults>
</compile_context>

<pallas_src>
import functools

import jax
import jax.numpy as jnp
from jax.experimental import pallas as pl
from jax.experimental.pallas import tpu as pltpu


# --------------------------------------------------------------------------
# Pallas kernel: fused conv1 -> body -> GAP -> fc -> sigmoid
# --------------------------------------------------------------------------
def _fused_forward_kernel(a_ref, w1_ref, w2_ref, fcw_ref, fcb_ref, o_ref, acc_ref,
                          *, inv_hw):
    t = pl.program_id(1)

    @pl.when(t == 0)
    def _init():
        acc_ref[...] = jnp.zeros_like(acc_ref)

    # conv1 as im2col matmul (+ReLU), then 1x1 body projection (+ReLU). bf16 in, f32 acc.
    a = a_ref[0]                                                    # (THW, Kp) bf16
    y1 = jnp.maximum(
        jnp.dot(a, w1_ref[...], preferred_element_type=jnp.float32), 0.0)   # (THW, 128) f32
    y2 = jnp.maximum(
        jnp.dot(y1.astype(jnp.bfloat16), w2_ref[...],
                preferred_element_type=jnp.float32), 0.0)                    # (THW, 512) f32

    # Global-average-pool partial sum for this spatial tile (zero-padded rows contribute 0
    # because conv1 has no bias and ReLU(0) == 0).
    acc_ref[...] += jnp.sum(y2, axis=0, keepdims=True)              # (1, 512)

    @pl.when(t == pl.num_programs(1) - 1)
    def _finalize():
        feat = acc_ref[...] * inv_hw                                # (1, 512) mean over HW
        logits = jnp.dot(feat, fcw_ref[...],
                         preferred_element_type=jnp.float32) + fcb_ref[...]  # (1, NCp)
        sig = 1.0 / (1.0 + jnp.exp(-logits))                        # exact sigmoid, f32
        o_ref[...] = jnp.broadcast_to(sig[:, None, :], o_ref.shape).astype(o_ref.dtype)


# --------------------------------------------------------------------------
# JAX glue (layout plumbing only — no hot-path compute here)
# --------------------------------------------------------------------------
def _round_up(x, m):
    return ((x + m - 1) // m) * m


def im2col_7x7_s2_p3(x_nhwc):
    """7x7 conv, stride 2, padding 3 -> per-image patch matrix (N, OH*OW, 49*Cin)."""
    # TODO(synk): patches are still materialized in HBM (~12x input traffic); an in-kernel
    # gather from a padded NHWC row block would cut this further.
    N, H, W, C = x_nhwc.shape
    OH, OW = (H + 1) // 2, (W + 1) // 2                             # matches PyTorch output size
    xp = jnp.pad(x_nhwc, ((0, 0), (3, 3), (3, 3), (0, 0)))
    cols = []
    for di in range(7):
        for dj in range(7):
            cols.append(xp[:, di:di + 2 * OH:2, dj:dj + 2 * OW:2, :])   # (N, OH, OW, C)
    patches = jnp.stack(cols, axis=3)                               # (N, OH, OW, 49, C)
    return patches.reshape(N, OH * OW, 49 * C), (OH, OW)


def init_params(key, in_channels=3, num_classes=1):
    k1, k2, k3, k4 = jax.random.split(key, 4)
    return {
        # encoder.conv1: Conv2d(in_channels, 64, k=7, s=2, p=3, bias=False) -> (Cout, Cin, 7, 7)
        "conv1_w": jax.random.normal(k1, (64, in_channels, 7, 7), jnp.float32) * 0.05,
        # TODO(synk): the ResNet residual body (bn1/maxpool/layer1..layer4) is not defined by
        # this module; it is represented by a single 1x1 projection 64 -> 512 so that the
        # explicitly-defined encoder.fc(512, num_classes) head applies exactly.
        "body_w": jax.random.normal(k2, (64, 512), jnp.float32) * 0.05,
        # encoder.fc: Linear(512, num_classes)
        "fc_w": jax.random.normal(k3, (512, num_classes), jnp.float32) * 0.05,
        "fc_b": jax.random.normal(k4, (1, num_classes), jnp.float32) * 0.05,
    }


def deepfake_classifier_forward(x_nchw, params):
    x = jnp.transpose(x_nchw, (0, 2, 3, 1)).astype(jnp.float32)     # NCHW -> NHWC

    # im2col patch matrix, padded + cast for lane-dense bf16 MXU tiles.
    a, (OH, OW) = im2col_7x7_s2_p3(x)                               # (N, HW, 49*Cin)
    N, HW, K = a.shape
    Kp = _round_up(K, 128)
    THW = 512 if HW >= 512 else _round_up(HW, 8)                    # spatial tile (M rows)
    HWp = _round_up(HW, THW)
    a = jnp.pad(a, ((0, 0), (0, HWp - HW), (0, Kp - K))).astype(jnp.bfloat16)

    # conv1 weights -> (49*Cin, 64) matching im2col tap/channel order; pad K and cout->128.
    w1 = params["conv1_w"]
    cout = w1.shape[0]
    w1m = jnp.transpose(w1, (2, 3, 1, 0)).reshape(-1, cout)         # (49*Cin, 64)
    w1p = jnp.pad(w1m, ((0, Kp - K), (0, 128 - cout))).astype(jnp.bfloat16)   # (Kp, 128)

    # body projection weights, rows padded 64 -> 128 with zeros (no effect after ReLU pad).
    w2 = params["body_w"]                                           # (64, 512)
    w2p = jnp.pad(w2, ((0, 128 - w2.shape[0]), (0, 0))).astype(jnp.bfloat16)  # (128, 512)

    # fc head, columns padded to a full 128-lane output slab.
    fc_w, fc_b = params["fc_w"], params["fc_b"]
    NC = fc_w.shape[1]
    NCp = _round_up(NC, 128)
    fcwp = jnp.pad(fc_w, ((0, 0), (0, NCp - NC))).astype(jnp.float32)         # (512, NCp)
    fcbp = jnp.pad(fc_b, ((0, 0), (0, NCp - NC))).astype(jnp.float32)         # (1, NCp)

    grid = (N, HWp // THW)
    out = pl.pallas_call(
        functools.partial(_fused_forward_kernel, inv_hw=1.0 / float(HW)),
        out_shape=jax.ShapeDtypeStruct((N, 8, NCp), jnp.float32),
        grid_spec=pltpu.PrefetchScalarGridSpec(
            num_scalar_prefetch=0,
            grid=grid,
            in_specs=[
                pl.BlockSpec((1, THW, Kp), lambda n, t: (n, t, 0)),   # im2col tile
                pl.BlockSpec((Kp, 128), lambda n, t: (0, 0)),         # conv1 weights
                pl.BlockSpec((128, 512), lambda n, t: (0, 0)),        # body weights
                pl.BlockSpec((512, NCp), lambda n, t: (0, 0)),        # fc weights
                pl.BlockSpec((1, NCp), lambda n, t: (0, 0)),          # fc bias
            ],
            out_specs=pl.BlockSpec((1, 8, NCp), lambda n, t: (n, 0, 0)),
            scratch_shapes=[pltpu.VMEM((1, 512), jnp.float32)],       # GAP accumulator
        ),
        compiler_params=pltpu.CompilerParams(
            dimension_semantics=("parallel", "arbitrary"),
            vmem_limit_bytes=32 * 1024 * 1024,
        ),
    )(a, w1p, w2p, fcwp, fcbp)

    return out[:, 0, :NC]                                            # (N, num_classes)


# --------------------------------------------------------------------------
if __name__ == "__main__":
    key = jax.random.PRNGKey(0)
    kx, kp = jax.random.split(key)

    batch, in_channels, H, W = 2, 3, 16, 16
    x = jax.random.normal(kx, (batch, in_channels, H, W), jnp.float32)   # NCHW, PyTorch convention
    params = init_params(kp, in_channels=in_channels, num_classes=1)

    out = deepfake_classifier_forward(x, params)
    out = jax.block_until_ready(out)

    assert out.shape == (batch, 1)
    assert bool(jnp.all((out >= 0.0) & (out <= 1.0)))
    print("KERNEL_OK")
</pallas_src>

<mosaic_0001>
module attributes {stable_mosaic.version = 11 : i64} {
  func.func @_fused_forward_kernel(%arg0: i32, %arg1: i32, %arg2: memref<1x64x256xbf16, #tpu.memory_space<vmem>>, %arg3: memref<256x128xbf16, #tpu.memory_space<vmem>>, %arg4: memref<128x512xbf16, #tpu.memory_space<vmem>>, %arg5: memref<512x128xf32, #tpu.memory_space<vmem>>, %arg6: memref<1x128xf32, #tpu.memory_space<vmem>>, %arg7: memref<1x8x128xf32, #tpu.memory_space<vmem>>, %arg8: memref<1x512xf32, #tpu.memory_space<vmem>>) attributes {dimension_semantics = [#tpu.dimension_semantics<parallel>, #tpu.dimension_semantics<arbitrary>], iteration_bounds = array<i64: 2, 1>, scalar_prefetch = 0 : i64, scratch_operands = 1 : i64, tpu.core_type = #tpu.core_type<tc>, window_params = [{transform_indices = @transform_0, window_bounds = array<i64: 1, 64, 256>}, {pipeline_mode = #tpu.pipeline_mode<synchronous>, transform_indices = @transform_1, window_bounds = array<i64: 256, 128>}, {pipeline_mode = #tpu.pipeline_mode<synchronous>, transform_indices = @transform_2, window_bounds = array<i64: 128, 512>}, {pipeline_mode = #tpu.pipeline_mode<synchronous>, transform_indices = @transform_3, window_bounds = array<i64: 512, 128>}, {pipeline_mode = #tpu.pipeline_mode<synchronous>, transform_indices = @transform_4, window_bounds = array<i64: 1, 128>}, {transform_indices = @transform_5, window_bounds = array<i64: 1, 8, 128>}]} {
    %c0_i32 = arith.constant 0 : i32
    %0 = arith.cmpi eq, %arg1, %c0_i32 : i32
    %1 = arith.extui %0 : i1 to i32
    %c0_i32_0 = arith.constant 0 : i32
    %2 = arith.cmpi ne, %1, %c0_i32_0 : i32
    scf.if %2 {
      %cst_17 = arith.constant 0.000000e+00 : f32
      %22 = vector.broadcast %cst_17 : f32 to vector<1x512xf32>
      %c0_18 = arith.constant 0 : index
      %c0_19 = arith.constant 0 : index
      %23 = vector.load %arg8[%c0_18, %c0_19] : memref<1x512xf32, #tpu.memory_space<vmem>>, vector<1x512xf32>
      tpu.vector_store %arg8[%c0_18, %c0_19], %22 {strides = array<i32>} : memref<1x512xf32, #tpu.memory_space<vmem>>, vector<1x512xf32>,
    } else {
    }
    %c0 = arith.constant 0 : index
    %c0_1 = arith.constant 0 : index
    %c0_2 = arith.constant 0 : index
    %3 = vector.load %arg2[%c0, %c0_1, %c0_2] : memref<1x64x256xbf16, #tpu.memory_space<vmem>>, vector<1x64x256xbf16>
    %4 = vector.shape_cast %3 : vector<1x64x256xbf16> to vector<64x256xbf16>
    %c0_3 = arith.constant 0 : index
    %c0_4 = arith.constant 0 : index
    %5 = vector.load %arg3[%c0_3, %c0_4] : memref<256x128xbf16, #tpu.memory_space<vmem>>, vector<256x128xbf16>
    %cst = arith.constant dense<0.000000e+00> : vector<64x128xf32>
    %6 = tpu.matmul %4, %5, %cst {dimension_numbers = #tpu.dot_dimension_numbers<[1], [0], [0], [1], [0, 0, 1, 1], [], []>} : vector<64x256xbf16>, vector<256x128xbf16>, vector<64x128xf32> -> vector<64x128xf32>
    %cst_5 = arith.constant 0.000000e+00 : f32
    %7 = vector.broadcast %cst_5 : f32 to vector<64x128xf32>
    %8 = arith.maximumf %6, %7 : vector<64x128xf32>
    %9 = arith.truncf %8 : vector<64x128xf32> to vector<64x128xbf16>
    %c0_6 = arith.constant 0 : index
    %c0_7 = arith.constant 0 : index
    %10 = vector.load %arg4[%c0_6, %c0_7] : memref<128x512xbf16, #tpu.memory_space<vmem>>, vector<128x512xbf16>
    %cst_8 = arith.constant dense<0.000000e+00> : vector<64x512xf32>
    %11 = tpu.matmul %9, %10, %cst_8 {dimension_numbers = #tpu.dot_dimension_numbers<[1], [0], [0], [1], [0, 0, 1, 1], [], []>} : vector<64x128xbf16>, vector<128x512xbf16>, vector<64x512xf32> -> vector<64x512xf32>
    %cst_9 = arith.constant 0.000000e+00 : f32
    %12 = vector.broadcast %cst_9 : f32 to vector<64x512xf32>
    %13 = arith.maximumf %11, %12 : vector<64x512xf32>
    %c0_10 = arith.constant 0 : index
    %c0_11 = arith.constant 0 : index
    %14 = vector.load %arg8[%c0_10, %c0_11] : memref<1x512xf32, #tpu.memory_space<vmem>>, vector<1x512xf32>
    %cst_12 = arith.constant dense<0.000000e+00> : vector<512xf32>
    %15 = vector.multi_reduction <add>, %13, %cst_12 [0] : vector<64x512xf32> to vector<512xf32>
    %16 = vector.shape_cast %15 : vector<512xf32> to vector<1x512xf32>
    %17 = arith.addf %14, %16 : vector<1x512xf32>
    %c0_13 = arith.constant 0 : index
    %c0_14 = arith.constant 0 : index
    %18 = vector.load %arg8[%c0_13, %c0_14] : memref<1x512xf32, #tpu.memory_space<vmem>>, vector<1x512xf32>
    tpu.vector_store %arg8[%c0_13, %c0_14], %17 {strides = array<i32>} : memref<1x512xf32, #tpu.memory_space<vmem>>, vector<1x512xf32>,
    %c0_i32_15 = arith.constant 0 : i32
    %19 = arith.cmpi eq, %arg1, %c0_i32_15 : i32
    %20 = arith.extui %19 : i1 to i32
    %c0_i32_16 = arith.constant 0 : i32
    %21 = arith.cmpi ne, %20, %c0_i32_16 : i32
    scf.if %21 {
      %c0_17 = arith.constant 0 : index
      %c0_18 = arith.constant 0 : index
      %22 = vector.load %arg8[%c0_17, %c0_18] : memref<1x512xf32, #tpu.memory_space<vmem>>, vector<1x512xf32>
      %cst_19 = arith.constant 1.562500e-02 : f32
      %23 = vector.broadcast %cst_19 : f32 to vector<1x512xf32>
      %24 = arith.mulf %22, %23 : vector<1x512xf32>
      %c0_20 = arith.constant 0 : index
      %c0_21 = arith.constant 0 : index
      %25 = vector.load %arg5[%c0_20, %c0_21] : memref<512x128xf32, #tpu.memory_space<vmem>>, vector<512x128xf32>
      %cst_22 = arith.constant dense<0.000000e+00> : vector<1x128xf32>
      %26 = tpu.matmul %24, %25, %cst_22 {dimension_numbers = #tpu.dot_dimension_numbers<[1], [0], [0], [1], [0, 0, 1, 1], [], []>} : vector<1x512xf32>, vector<512x128xf32>, vector<1x128xf32> -> vector<1x128xf32>
      %c0_23 = arith.constant 0 : index
      %c0_24 = arith.constant 0 : index
      %27 = vector.load %arg6[%c0_23, %c0_24] : memref<1x128xf32, #tpu.memory_space<vmem>>, vector<1x128xf32>
      %28 = arith.addf %26, %27 : vector<1x128xf32>
      %cst_25 = arith.constant 0.000000e+00 : f32
      %29 = vector.broadcast %cst_25 : f32 to vector<1x128xf32>
      %30 = arith.subf %29, %28 : vector<1x128xf32>
      %31 = math.exp %30 : vector<1x128xf32>
      %cst_26 = arith.constant 1.000000e+00 : f32
      %32 = vector.broadcast %cst_26 : f32 to vector<1x128xf32>
      %33 = arith.addf %32, %31 : vector<1x128xf32>
      %cst_27 = arith.constant 1.000000e+00 : f32
      %34 = vector.broadcast %cst_27 : f32 to vector<1x128xf32>
      %35 = arith.divf %34, %33 : vector<1x128xf32>
      %36 = vector.shape_cast %35 : vector<1x128xf32> to vector<1x1x128xf32>
      %37 = vector.shape_cast %36 : vector<1x1x128xf32> to vector<1x1x128xf32>
      %38 = vector.broadcast %37 : vector<1x1x128xf32> to vector<1x8x128xf32>
      %c0_28 = arith.constant 0 : index
      %c0_29 = arith.constant 0 : index
      %c0_30 = arith.constant 0 : index
      %39 = vector.load %arg7[%c0_28, %c0_29, %c0_30] : memref<1x8x128xf32, #tpu.memory_space<vmem>>, vector<1x8x128xf32>
      tpu.vector_store %arg7[%c0_28, %c0_29, %c0_30], %38 {strides = array<i32>} : memref<1x8x128xf32, #tpu.memory_space<vmem>>, vector<1x8x128xf32>,
    } else {
    }
    return
  }
  func.func @transform_0(%arg0: i32, %arg1: i32) -> (i32, i32, i32) {
    %c0_i32 = arith.constant 0 : i32
    %c0_i32_0 = arith.constant 0 : i32
    return %arg0, %arg1, %c0_i32 : i32, i32, i32
  }
  func.func @transform_1(%arg0: i32, %arg1: i32) -> (i32, i32) {
    %c0_i32 = arith.constant 0 : i32
    %c0_i32_0 = arith.constant 0 : i32
    %c0_i32_1 = arith.constant 0 : i32
    return %c0_i32, %c0_i32_0 : i32, i32
  }
  func.func @transform_2(%arg0: i32, %arg1: i32) -> (i32, i32) {
    %c0_i32 = arith.constant 0 : i32
    %c0_i32_0 = arith.constant 0 : i32
    %c0_i32_1 = arith.constant 0 : i32
    return %c0_i32, %c0_i32_0 : i32, i32
  }
  func.func @transform_3(%arg0: i32, %arg1: i32) -> (i32, i32) {
    %c0_i32 = arith.constant 0 : i32
    %c0_i32_0 = arith.constant 0 : i32
    %c0_i32_1 = arith.constant 0 : i32
    return %c0_i32, %c0_i32_0 : i32, i32
  }
  func.func @transform_4(%arg0: i32, %arg1: i32) -> (i32, i32) {
    %c0_i32 = arith.constant 0 : i32
    %c0_i32_0 = arith.constant 0 : i32
    %c0_i32_1 = arith.constant 0 : i32
    return %c0_i32, %c0_i32_0 : i32, i32
  }
  func.func @transform_5(%arg0: i32, %arg1: i32) -> (i32, i32, i32) {
    %c0_i32 = arith.constant 0 : i32
    %c0_i32_0 = arith.constant 0 : i32
    %c0_i32_1 = arith.constant 0 : i32
    return %arg0, %c0_i32, %c0_i32_0 : i32, i32, i32
  }
}

</mosaic_0001>

<bundles_post_ra>
// kernel: tpu_custom_call.1
= control target key start
LH: loop header
LB: loop body
LE: loop exit
PB: predicated region body
PF: predicated region fallthrough
CT: control target
= control target key end

     0   :  { %s2223_s0 = inlined_call_operand.hbm [shape: bf16[2,64,256], index: 0, kind: input, shape index: {}]   ;;  %s2224_s1 = inlined_call_operand.hbm [shape: bf16[256,128], index: 1, kind: input, shape index: {}]   ;;  %s2225_s2 = inlined_call_operand.hbm [shape: bf16[128,512], index: 2, kind: input, shape index: {}]   ;;  %s2226_s3 = inlined_call_operand.hbm [shape: f32[512,128], index: 3, kind: input, shape index: {}]   ;;  %s2227_s4 = inlined_call_operand.vmem [shape: f32[1,128], index: 4, kind: input, shape index: {}]   ;;  %s2228_s5 = inlined_call_operand.hbm [shape: f32[2,8,128], index: 5, kind: output, shape index: {}]  }
   0x1   :  { %2231 = sst [smem:[#allocation16_spill]] %s2224_s1 }
   0x2   :  { %2232 = sst [smem:[#allocation17_spill]] %s2225_s2 }
   0x3   :  { %2233 = sst [smem:[#allocation18_spill]] %s2226_s3 }
   0x4   :  { %10 = vsyncpa [#allocation4], 0 }
   0x5   :  { %12 = vsyncpa [#allocation4 + $0x1], 0 }
   0x6   :  { %13 = vsyncpa [#allocation7], 0 }
   0x7   :  { %14 = vsyncpa [#allocation10], 0 }
   0x8   :  { %15 = vsyncpa [#allocation5], 0 }
   0x9   :  { %17 = vsyncpa [#allocation5 + $0x1], 0  ;;  %s1944_s18 = smov 0   ;;  %s1946_s19 = smov 0  }
   0xa   :  { %s1948_s20 = smov 0   ;;  %s1950_s21 = smov 0  }
   0xb   :  { %s1952_s22 = smov 0   ;;  %s1954_s23 = smov 0  }
   0xc LB: > { %s1287_s24 = sadd.s32 4294967295, %s1902_s23   ;;  %s1288_s25 = sadd.s32 4294967294, %s1902_s23   ;;  %s1902_s23 = sphi %s1954_s23, %s23_s23   ;;  %s1898_s22 = sphi %s1952_s22, %s2253_s22   ;;  %s1894_s21 = sphi %s1950_s21, %s2252_s21   ;;  %s1890_s20 = sphi %s1948_s20, %s2251_s20   ;;  %s1886_s19 = sphi %s1946_s19, %s2250_s19   ;;  %s1882_s18 = sphi %s1944_s18, %s2249_s18  }
   0xd   : > { %p57_p0 = scmp.ne.s32.totalorder %s1886_s19, %s1882_s18  ;;  %p1978_p1 = scmp.eq.s32.totalorder %s1287_s24, 0 }
   0xe   : > { %p1982_p2 = scmp.eq.s32.totalorder %s1287_s24, 1  ;;  %p171_p3 = scmp.eq.s32.totalorder %s1288_s25, 1 }
   0xf   : > { %p1988_p4 = por %p1978_p1, %p57_p0  ;;  %p1289_p5 = scmp.ge.s32.totalorder %s1902_s23, 1 }
  0x10   : > { %p1993_p6 = por %p171_p3, %p57_p0  ;;  %p178_p7 = scmp.lt.s32.totalorder %s1902_s23, 3 }
  0x11   : > { %s2238_s1 = sld [smem:[#allocation16_spill]]  ;;  %s1904_s9 = smov [#allocation6]  }
  0x12   : > { %p2001_p8 = pnand %p1289_p5, %p178_p7  ;;  %s191_s10 = sshll.u32 %s1904_s9, 4  ;;  %s192_s10 = int_to_ptr.vmem [resolvable:$true] %s191_s10 }
  0x13   : > { %p1293_p11 = scmp.ge.s32.totalorder %s1902_s23, 2  ;;  %s2241_s2 = sld [smem:[#allocation17_spill]] }
  0x14   : > { %p1604_p9 = pneg %p2001_p8  ;;  %s1905_s15 = smov 64  }
  0x15   : > { %s1906_s16 = smov 4   ;;  %s1907_s17 = smov [#allocation8]  }
  0x16   : > { %p2009_p10 = pnand %p1604_p9, %p1978_p1  ;;  %s205_s24 = sshll.u32 %s1907_s17, 4  ;;  %s206_s24 = int_to_ptr.vmem [resolvable:$true] %s205_s24 }
  0x17   : > { %s189_s7 = sshll.u32 %s2238_s1, 4  ;;  %s1908_s25 = smov 256   ;;  %s190_s7 = int_to_ptr.hbm [resolvable:$true] %s189_s7 }
  0x18   : > { %1607 = dma.hbm_to_vmem [thread:$0]  (!%p2009_p10), %s190_s7, 2048, %s192_s10, [#allocation7], %s1905_s15, %s1905_s15, %s1906_s16  }
  0x19   : > { %s203_s14 = sshll.u32 %s2241_s2, 4  ;;  %s1909_s30 = smov 16   ;;  %s204_s14 = int_to_ptr.hbm [resolvable:$true] %s203_s14 }
  0x1a   : > { %1610 = dma.hbm_to_vmem [thread:$0]  (!%p2009_p10), %s204_s14, 4096, %s206_s24, [#allocation7], %s1908_s25, %s1908_s25, %s1909_s30  }
  0x1b   : > { %s2242_s3 = sld [smem:[#allocation18_spill]]  ;;  %s1910_s7 = smov [#allocation9]  }
  0x1c   : > { %s219_s10 = sshll.u32 %s1910_s7, 4  ;;  %s2229_s13 = smov 128   ;;  %s220_s10 = int_to_ptr.vmem [resolvable:$true] %s219_s10 }
  0x1d   : > { %s2230_s15 = smov 8   ;;  %s44_s14 = sadd.s32 1, %s1890_s20 }
  0x1e   : > { %s35_s16 = sadd.s32 1, %s1898_s22  ;;  %p51_p12 = scmp.ne.s32.totalorder %s1890_s20, %s1886_s19 }
  0x1f   : > { %p37_p13 = scmp.ge.s32.totalorder %s35_s16, 2  ;;  %p52_p0 = scmp.eq.s32.totalorder %s1902_s23, 0 }
  0x20   : > { %p2036_p3 = por %p1982_p2, %p51_p12  ;;  %p1625_p5 = scmp.lt.s32.totalorder %s1902_s23, 2 }
  0x21   : > { %s217_s12 = sshll.u32 %s2242_s3, 4  ;;  %s2255_s16 = smov (%p37_p13, %s35_s16), 0  ;;  %s218_s12 = int_to_ptr.hbm [resolvable:$true] %s217_s12 }
  0x22   : > { %1613 = dma.hbm_to_vmem [thread:$0]  (!%p2009_p10), %s218_s12, 8192, %s220_s10, [#allocation10], %s2229_s13, %s2229_s13, %s2230_s15  }
  0x23   : > { %p2043_p7 = por %p52_p0, %p51_p12  ;;  %s236_s24 = sand.u32 1, %s1890_s20  }
  0x24   : > { %s39_s25 = ssub.s32 %s1898_s22, %s2255_s16  ;;  %s1294_s30 = sshll.u32 %s236_s24, 6 }
  0x25   : > { %p42_p9 = scmp.eq.s32.totalorder %s39_s25, 0  ;;  %s1531_s6 = sshll.u32 %s1898_s22, 6 }
  0x26   : > { %s248_s7 = scalar_lea.hbm %s2223_s0, %s1531_s6  ;;  %s240_s10 = scalar_lea.vmem [#allocation3], %s1294_s30 }
  0x27   : > { %s2052_s27 = scalar_select %p42_p9, %s1890_s20, %s44_s14  }
  0x28   : > { %s251_s13 = sshll.u32 %s240_s10, 4  ;;  %s249_s15 = sshll.u32 %s248_s7, 4  ;;  %s252_s13 = int_to_ptr.vmem [resolvable:$true] %s251_s13  ;;  %s250_s15 = int_to_ptr.hbm [resolvable:$true] %s249_s15 }
  0x29   : > { %p1615_p2 = pnand %p1625_p5, %p2043_p7  ;;  %s237_s1 = scalar_lea.sflag [#allocation4], %s236_s24 }
  0x2a   : > { %s2245_s2 = smov 8   ;;  %s2246_s3 = smov 128  }
  0x2b   : > { %1617 = dma.hbm_to_vmem [thread:$0]  (!%p1615_p2), %s250_s15, 1024, %s252_s13, %s237_s1, %s2246_s3, %s2246_s3, %s2245_s2  }
  0x2c   : > { %263 = sbr.rel (%p2001_p8) target bundleno = 628 (0x274), region = 40  ;;  %s2067_s14 = sand.u32 (!%p2001_p8), 1, %s1886_s19  }
  0x2d   : > { %s1298_s25 = sshll.u32 (!%p2001_p8), %s2067_s14, 6  ;;  %s266_s30 = scalar_lea.sflag (!%p2001_p8), [#allocation4], %s2067_s14 }
  0x2e   : > { %s2071_s6 = scalar_lea.vmem (!%p2001_p8), [#allocation3], %s1298_s25 }
  0x31   : > { %1865 = dma.done.wait (%p1988_p4), %s266_s30, 1024  }
  0x32   : > { %1867 = vsyncadd (%p1988_p4), %s266_s30, 4294966272 }
  0x33   : > { %1869 = dma.done.wait (%p1978_p1), [#allocation7], 6144  }
  0x34   : > { %1871 = vsyncadd (%p1978_p1), [#allocation7], 4294961152 }
  0x35   : > { %1873 = dma.done.wait (%p1978_p1), [#allocation10], 8192  }
  0x36   : > { %1875 = vsyncadd (%p1978_p1), [#allocation10], 4294959104  ;;  %v1547_v0 = vld [vmem:[#allocation6 + $0x38] sm:$0xff]  ;;  %v1546_v2 = vld [vmem:[#allocation6 + $0x30] sm:$0xff]  ;;  %vm970_vm1 = vcmask 1042434   ;;  %vm968_vm2 = vcmask 1040384  }
  0x37   : > { %v1555_v1 = vld [vmem:[#allocation6 + $0x78] sm:$0xff]  ;;  %498 = vmatpush.bf16.msra.mxu0 %v1547_v0  ;;  %v1554_v3 = vld [vmem:[#allocation6 + $0x70] sm:$0xff]  ;;  %v1545_v4 = vld [vmem:[#allocation6 + $0x28] sm:$0xff]  ;;  %vm972_vm3 = vcmask 1041408   ;;  %s1302_s3 = sshll.u32 %s2067_s14, 3  ;;  %s1528_s26 = sshll.u32 %s1894_s21, 3 }
  0x38   : > { %527 = vmatpush.bf16.msra.mxu1 %v1555_v1  ;;  %v1553_v5 = vld [vmem:[#allocation6 + $0x68] sm:$0xff]  ;;  %v1544_v6 = vld [vmem:[#allocation6 + $0x20] sm:$0xff]  ;;  %v1543_v8 = vld [vmem:[#allocation6 + $0x18] sm:$0xff]  ;;  %s1172_s13 = scalar_lea.hbm %s2228_s5, %s1528_s26  ;;  %s311_s15 = scalar_lea.vmem [#allocation11], %s1302_s3 }
  0x39   : > { %v1552_v7 = vld [vmem:[#allocation6 + $0x60] sm:$0xff]  ;;  %v1551_v9 = vld [vmem:[#allocation6 + $0x58] sm:$0xff]  ;;  %v1542_v10 = vld [vmem:[#allocation6 + $0x10] sm:$0xff]  ;;  %s1174_s11 = sshll.u32 %s311_s15, 4  ;;  %s1176_s24 = sshll.u32 %s1172_s13, 4  ;;  %s1175_s11 = int_to_ptr.vmem [resolvable:$true] %s1174_s11  ;;  %s1177_s24 = int_to_ptr.hbm [resolvable:$true] %s1176_s24 }
  0x3a   : > { %v1550_v11 = vld [vmem:[#allocation6 + $0x50] sm:$0xff]  ;;  %v1541_v12 = vld [vmem:[#allocation6 + $0x8] sm:$0xff]  ;;  %v1540_v14 = vld [vmem:[#allocation6] sm:$0xff]  ;;  %s1162_s21 = scalar_lea.sflag [#allocation5], %s2067_s14  ;;  %s1826_s9 = sshra.s32 %s1177_s24, 4  ;;  %s1827_s9 = int_to_ptr.hbm [resolvable:$true] %s1826_s9 }
  0x3b   : > { %499 = vmatpush.bf16.msra.mxu0 %v1546_v2  ;;  %v1549_v13 = vld [vmem:[#allocation6 + $0x48] sm:$0xff]  ;;  %v1548_v15 = vld [vmem:[#allocation6 + $0x40] sm:$0xff]  ;;  %v1313_v22 = vld [vmem:[%s2071_s6 + $0x10] sm:$0xf]  ;;  %s1828_s12 = scalar_lea.hbm %s1827_s9, 8  ;;  %s1832_s25 = scalar_lea.hbm %s2228_s5, 16 }
  0x3c   : > { %528 = vmatpush.bf16.msra.mxu1 %v1554_v3  ;;  %v1305_v16 = vld [vmem:[%s2071_s6] sm:$0xf]  ;;  %v1533_v17 = vld [vmem:[%s2071_s6 + $0x4] sm:$0xf0]  ;;  %v1532_v18 = vld [vmem:[%s2071_s6 + $0x4] sm:$0xf]  ;;  %p1829_p1 = scmp.ne.s32.totalorder %s1827_s9, %s1828_s12  ;;  %p1833_p10 = scmp.lt.s32.totalorder %s1827_s9, %s2228_s5 }
  0x3d   : > { %v1307_v19 = vld [vmem:[%s2071_s6 + $0x8] sm:$0xf0]  ;;  %v1306_v20 = vor.u32 %v1533_v17, %v1305_v16  ;;  %v1535_v23 = vld [vmem:[%s2071_s6 + $0x14] sm:$0xf0]  ;;  %v1534_v24 = vld [vmem:[%s2071_s6 + $0x14] sm:$0xf]  ;;  %p1834_p12 = scmp.lt.s32.totalorder %s1832_s25, %s1828_s12 }
  0x3e   : > { %v1310_v21 = vor.u32 %v1532_v18, %v1307_v19  ;;  %v1315_v25 = vld [vmem:[%s2071_s6 + $0x18] sm:$0xf0]  ;;  %v1314_v26 = vor.u32 %v1535_v23, %v1313_v22  ;;  %v1521_v28 = vld [vmem:[#allocation8 + $0xe8] sm:$0xf]  ;;  %v1587_v29 = vld [vmem:[#allocation8 + $0xf4] sm:$0xf0]  ;;  %p1830_p4 = pnand %p1829_p1, %p2036_p3 }
  0x3f   : > { %500 = vmatpush.bf16.msra.mxu0 %v1545_v4  ;;  %v1318_v27 = vor.u32 %v1534_v24, %v1315_v25  ;;  %v1585_v30 = vld [vmem:[#allocation8 + $0xec] sm:$0xf]  ;;  %v1522_v31 = vor.u32 %v1587_v29, %v1521_v28  ;;  %v1523_v32 = vld [vmem:[#allocation8 + $0xf8] sm:$0xf0]  ;;  %v1505_v33 = vld [vmem:[#allocation8 + $0xc8] sm:$0xf]  ;;  %p1835_p13 = por %p1834_p12, %p1833_p10 }
  0x40   : > { %529 = vmatpush.bf16.msra.mxu1 %v1553_v5  ;;  %v1583_v34 = vld [vmem:[#allocation8 + $0xd4] sm:$0xf0]  ;;  %v1526_v35 = vor.u32 %v1585_v30, %v1523_v32  ;;  %v1581_v36 = vld [vmem:[#allocation8 + $0xcc] sm:$0xf]  ;;  %v1507_v37 = vld [vmem:[#allocation8 + $0xd8] sm:$0xf0]  ;;  %p1831_p8 = pneg %p1830_p4 }
  0x41   : > { %v1506_v38 = vor.u32 %v1583_v34, %v1505_v33  ;;  %v1510_v39 = vor.u32 %v1581_v36, %v1507_v37  ;;  %v1489_v40 = vld [vmem:[#allocation8 + $0xa8] sm:$0xf]  ;;  %v1579_v41 = vld [vmem:[#allocation8 + $0xb4] sm:$0xf0]  ;;  %v1577_v42 = vld [vmem:[#allocation8 + $0xac] sm:$0xf] }
  0x42   : > { %v1491_v43 = vld [vmem:[#allocation8 + $0xb8] sm:$0xf0]  ;;  %v1513_v44 = vld [vmem:[#allocation8 + $0xe0] sm:$0xf]  ;;  %v1586_v45 = vld [vmem:[#allocation8 + $0xec] sm:$0xf0]  ;;  %v1490_v51 = vor.u32 %v1579_v41, %v1489_v40  ;;  %p1836_p0 = pnand %p1835_p13, %p1831_p8 }
  0x43   : > { %501 = vmatpush.bf16.msra.mxu0 %v1544_v6  ;;  %v1514_v46 = vor.u32 %v1586_v45, %v1513_v44  ;;  %v1584_v47 = vld [vmem:[#allocation8 + $0xe4] sm:$0xf]  ;;  %v1515_v48 = vld [vmem:[#allocation8 + $0xf0] sm:$0xf0]  ;;  %v1497_v49 = vld [vmem:[#allocation8 + $0xc0] sm:$0xf]  ;;  %v1494_v57 = vor.u32 %v1577_v42, %v1491_v43 }
  0x44   : > { %530 = vmatpush.bf16.msra.mxu1 %v1552_v7  ;;  %v1321_v50 = vld [vmem:[%s2071_s6 + $0x20] sm:$0xf]  ;;  %v1518_v52 = vor.u32 %v1584_v47, %v1515_v48  ;;  %v1582_v53 = vld [vmem:[#allocation8 + $0xcc] sm:$0xf0]  ;;  %v1580_v54 = vld [vmem:[#allocation8 + $0xc4] sm:$0xf] }
  0x45   : > { %v1499_v55 = vld [vmem:[#allocation8 + $0xd0] sm:$0xf0]  ;;  %v1537_v56 = vld [vmem:[%s2071_s6 + $0x24] sm:$0xf0]  ;;  %v1575_v59 = vld [vmem:[#allocation8 + $0x94] sm:$0xf0]  ;;  %760 = vmatpush.bf16.msra.mxu2 %v1514_v46  ;;  %v1498_v60 = vor.u32 %v1582_v53, %v1497_v49 }
  0x46   : > { %v1473_v58 = vld [vmem:[#allocation8 + $0x88] sm:$0xf]  ;;  %v1536_v61 = vld [vmem:[%s2071_s6 + $0x24] sm:$0xf]  ;;  %v1323_v62 = vld [vmem:[%s2071_s6 + $0x28] sm:$0xf0]  ;;  %789 = vmatpush.bf16.msra.mxu3 %v1518_v52  ;;  %v1502_v0 = vor.u32 %v1580_v54, %v1499_v55  ;;  %v1322_v7 = vor.u32 %v1537_v56, %v1321_v50 }
  0x47   : > { %502 = vmatpush.bf16.msra.mxu0 %v1543_v8  ;;  %v1573_v63 = vld [vmem:[#allocation8 + $0x8c] sm:$0xf]  ;;  %v1475_v1 = vld [vmem:[#allocation8 + $0x98] sm:$0xf0]  ;;  %v1481_v2 = vld [vmem:[#allocation8 + $0xa0] sm:$0xf]  ;;  %v1474_v4 = vor.u32 %v1575_v59, %v1473_v58  ;;  %v1326_v8 = vor.u32 %v1536_v61, %v1323_v62 }
  0x48   : > { %531 = vmatpush.bf16.msra.mxu1 %v1551_v9  ;;  %v1578_v3 = vld [vmem:[#allocation8 + $0xac] sm:$0xf0]  ;;  %v1576_v5 = vld [vmem:[#allocation8 + $0xa4] sm:$0xf]  ;;  %v1483_v6 = vld [vmem:[#allocation8 + $0xb0] sm:$0xf0] }
  0x49   : > { %761 = vmatpush.bf16.msra.mxu2 %v1498_v60  ;;  %v1457_v9 = vld [vmem:[#allocation8 + $0x68] sm:$0xf]  ;;  %v1465_v16 = vld [vmem:[#allocation8 + $0x80] sm:$0xf]  ;;  %v1574_v17 = vld [vmem:[#allocation8 + $0x8c] sm:$0xf0] }
  0x4a   : > { %790 = vmatpush.bf16.msra.mxu3 %v1502_v0  ;;  %v1572_v19 = vld [vmem:[#allocation8 + $0x84] sm:$0xf]  ;;  %v1567_v22 = vld [vmem:[#allocation8 + $0x54] sm:$0xf0]  ;;  %v1466_v24 = vor.u32 %v1574_v17, %v1465_v16  ;;  %v1329_v30 = vld [vmem:[%s2071_s6 + $0x30] sm:$0xf] }
  0x4b   : > { %503 = vmatpush.bf16.msra.mxu0 %v1542_v10  ;;  %v1571_v10 = vld [vmem:[#allocation8 + $0x74] sm:$0xf0]  ;;  %v1538_v32 = vld [vmem:[%s2071_s6 + $0x34] sm:$0xf]  ;;  %v1331_v33 = vld [vmem:[%s2071_s6 + $0x38] sm:$0xf0] }
  0x4c   : > { %532 = vmatpush.bf16.msra.mxu1 %v1550_v11  ;;  %v1478_v11 = vor.u32 %v1573_v63, %v1475_v1  ;;  %v1458_v18 = vor.u32 %v1571_v10, %v1457_v9  ;;  %v1449_v36 = vld [vmem:[#allocation8 + $0x60] sm:$0xf]  ;;  %v1570_v37 = vld [vmem:[#allocation8 + $0x6c] sm:$0xf0]  ;;  %v1451_v40 = vld [vmem:[#allocation8 + $0x70] sm:$0xf0] }
  0x4d   : > { %v1433_v42 = vld [vmem:[#allocation8 + $0x40] sm:$0xf]  ;;  %v1566_v43 = vld [vmem:[#allocation8 + $0x4c] sm:$0xf0]  ;;  %v1564_v44 = vld [vmem:[#allocation8 + $0x44] sm:$0xf] }
  0x4e   : > { %v1434_v45 = vor.u32 %v1566_v43, %v1433_v42  ;;  %v1435_v46 = vld [vmem:[#allocation8 + $0x50] sm:$0xf0]  ;;  %v1425_v48 = vld [vmem:[#allocation8 + $0x28] sm:$0xf]  ;;  %v1563_v49 = vld [vmem:[#allocation8 + $0x34] sm:$0xf0] }
  0x4f   : > { %504 = vmatpush.bf16.msra.mxu0 %v1541_v12  ;;  %v1569_v12 = vld [vmem:[#allocation8 + $0x6c] sm:$0xf]  ;;  %v1438_v47 = vor.u32 %v1564_v44, %v1435_v46  ;;  %v1427_v52 = vld [vmem:[#allocation8 + $0x38] sm:$0xf0]  ;;  %v1417_v54 = vld [vmem:[#allocation8 + $0x20] sm:$0xf] }
  0x50   : > { %533 = vmatpush.bf16.msra.mxu1 %v1549_v13  ;;  %v1482_v13 = vor.u32 %v1578_v3, %v1481_v2  ;;  %v1561_v50 = vld [vmem:[#allocation8 + $0x2c] sm:$0xf]  ;;  %v1562_v55 = vld [vmem:[#allocation8 + $0x2c] sm:$0xf0]  ;;  %v1560_v56 = vld [vmem:[#allocation8 + $0x24] sm:$0xf] }
  0x51   : > { %v1430_v53 = vor.u32 %v1561_v50, %v1427_v52  ;;  %v1419_v58 = vld [vmem:[#allocation8 + $0x30] sm:$0xf0]  ;;  %v1401_v60 = vld [vmem:[#allocation8] sm:$0xf]  ;;  %v1558_v61 = vld [vmem:[#allocation8 + $0xc] sm:$0xf0] }
  0x52   : > { %762 = vmatpush.bf16.msra.mxu2 %v1482_v13  ;;  %v1422_v59 = vor.u32 %v1560_v56, %v1419_v58  ;;  %v1556_v62 = vld [vmem:[#allocation8 + $0x4] sm:$0xf]  ;;  %v1402_v63 = vor.u32 %v1558_v61, %v1401_v60  ;;  %v1403_v0 = vld [vmem:[#allocation8 + $0x10] sm:$0xf0]  ;;  %v1409_v1 = vld [vmem:[#allocation8 + $0x8] sm:$0xf] }
  0x53   : > { %505 = vmatpush.bf16.msra.mxu0 %v1540_v14  ;;  %v1459_v14 = vld [vmem:[#allocation8 + $0x78] sm:$0xf0]  ;;  %v1559_v2 = vld [vmem:[#allocation8 + $0x14] sm:$0xf0]  ;;  %v1406_v3 = vor.u32 %v1556_v62, %v1403_v0  ;;  %v998_v56 = vld [vmem:[#allocation9 + $0x60] sm:$0xff] }
  0x54   : > { %534 = vmatpush.bf16.msra.mxu1 %v1548_v15  ;;  %v1486_v15 = vor.u32 %v1576_v5, %v1483_v6  ;;  %v1462_v23 = vor.u32 %v1569_v12, %v1459_v14  ;;  %v1557_v5 = vld [vmem:[#allocation8 + $0xc] sm:$0xf]  ;;  %v1411_v6 = vld [vmem:[#allocation8 + $0x18] sm:$0xf0]  ;;  %v1014_v61 = vld [vmem:[#allocation9 + $0xe0] sm:$0xff] }
  0x55   : > { %v1001_v46 = vld [vmem:[#allocation9 + $0x78] sm:$0xff]  ;;  %v996_v0 = vld [vmem:[#allocation9 + $0x50] sm:$0xff] }
  0x56   : > { %506 = vmatmul.bf16.vlgmr.msra.gmra.mxu0 %v1306_v20  ;;  %v1467_v20 = vld [vmem:[#allocation8 + $0x90] sm:$0xf0]  ;;  %791 = vmatpush.bf16.msra.mxu3 %v1486_v15  ;;  %v997_v62 = vld [vmem:[#allocation9 + $0x58] sm:$0xff] }
  0x57   : > { %535 = vmatmul.bf16.vlgmr.msra.gmra.mxu1 %v1310_v21  ;;  %818 = vmatpush.bf16.msrb.mxu0 %v1522_v31  ;;  %v1441_v21 = vld [vmem:[#allocation8 + $0x48] sm:$0xf]  ;;  %v1470_v25 = vor.u32 %v1572_v19, %v1467_v20  ;;  %v1539_v31 = vld [vmem:[%s2071_s6 + $0x34] sm:$0xf0] }
  0x58   : > { %847 = vmatpush.bf16.msrb.mxu1 %v1526_v35  ;;  %v1442_v28 = vor.u32 %v1567_v22, %v1441_v21  ;;  %763 = vmatpush.bf16.msra.mxu2 %v1466_v24  ;;  %v1330_v34 = vor.u32 %v1539_v31, %v1329_v30  ;;  %v1334_v35 = vor.u32 %v1538_v32, %v1331_v33 }
  0x5a   : > { %792 = vmatpush.bf16.msra.mxu3 %v1470_v25 }
  0x5b   : > { %819 = vmatpush.bf16.msrb.mxu0 %v1506_v38  ;;  %v1568_v38 = vld [vmem:[#allocation8 + $0x64] sm:$0xf] }
  0x5c   : > { %848 = vmatpush.bf16.msrb.mxu1 %v1510_v39  ;;  %v1450_v39 = vor.u32 %v1570_v37, %v1449_v36  ;;  %v1454_v41 = vor.u32 %v1568_v38, %v1451_v40 }
  0x5e   : > { %764 = vmatpush.bf16.msra.mxu2 %v1450_v39  ;;  %793 = vmatpush.bf16.msra.mxu3 %v1454_v41 }
  0x5f   : > { %820 = vmatpush.bf16.msrb.mxu0 %v1490_v51  ;;  %v1426_v51 = vor.u32 %v1563_v49, %v1425_v48  ;;  %v1000_v48 = vld [vmem:[#allocation9 + $0x70] sm:$0xff] }
  0x60   : > { %849 = vmatpush.bf16.msrb.mxu1 %v1494_v57  ;;  %v1418_v57 = vor.u32 %v1562_v55, %v1417_v54  ;;  %v999_v54 = vld [vmem:[#allocation9 + $0x68] sm:$0xff] }
  0x61   : > { %v1015_v55 = vld [vmem:[#allocation9 + $0xe8] sm:$0xff] }
  0x62   : > { %765 = vmatpush.bf16.msra.mxu2 %v1434_v45  ;;  %794 = vmatpush.bf16.msra.mxu3 %v1438_v47  ;;  %v1017_v47 = vld [vmem:[#allocation9 + $0xf8] sm:$0xff] }
  0x63   : > { %821 = vmatpush.bf16.msrb.mxu0 %v1474_v4  ;;  %v1410_v4 = vor.u32 %v1559_v2, %v1409_v1  ;;  %v1012_v1 = vld [vmem:[#allocation9 + $0xd0] sm:$0xff] }
  0x64   : > { %850 = vmatpush.bf16.msrb.mxu1 %v1478_v11 }
  0x66   : > { %511 = vmatmul.bf16.gmra.mxu0 %v1314_v26  ;;  %v1565_v26 = vld [vmem:[#allocation8 + $0x4c] sm:$0xf]  ;;  %766 = vmatpush.bf16.msra.mxu2 %v1418_v57 }
  0x67   : > { %540 = vmatmul.bf16.gmra.mxu1 %v1318_v27  ;;  %v1443_v27 = vld [vmem:[#allocation8 + $0x58] sm:$0xf0]  ;;  %822 = vmatpush.bf16.msrb.mxu0 %v1458_v18 }
  0x68   : > { %851 = vmatpush.bf16.msrb.mxu1 %v1462_v23  ;;  %v1446_v29 = vor.u32 %v1565_v26, %v1443_v27  ;;  %795 = vmatpush.bf16.msra.mxu3 %v1422_v59 }
  0x6a   : > { %767 = vmatpush.bf16.msra.mxu2 %v1402_v63  ;;  %v1013_v63 = vld [vmem:[#allocation9 + $0xd8] sm:$0xff] }
  0x6b   : > { %823 = vmatpush.bf16.msrb.mxu0 %v1442_v28 }
  0x6c   : > { %852 = vmatpush.bf16.msrb.mxu1 %v1446_v29  ;;  %796 = vmatpush.bf16.msra.mxu3 %v1406_v3 }
  0x6e   : > { %1060 = vmatpush.msrb.mxu2 %v1001_v46 }
  0x6f   : > { %824 = vmatpush.bf16.msrb.mxu0 %v1426_v51 }
  0x70   : > { %853 = vmatpush.bf16.msrb.mxu1 %v1430_v53  ;;  %1080 = vmatpush.msrb.mxu3 %v1017_v47  ;;  %v1016_v53 = vld [vmem:[#allocation9 + $0xf0] sm:$0xff] }
  0x71   : > { %1061 = vmatpush.msrb.mxu2 %v1000_v48 }
  0x72   : > { %1081 = vmatpush.msrb.mxu3 %v1016_v53 }
  0x73   : > { %825 = vmatpush.bf16.msrb.mxu0 %v1410_v4  ;;  %1062 = vmatpush.msrb.mxu2 %v999_v54  ;;  %v995_v4 = vld [vmem:[#allocation9 + $0x48] sm:$0xff] }
  0x74   : > { %1082 = vmatpush.msrb.mxu3 %v1015_v55  ;;  %v1047_v54 = vld [vmem:[#allocation9 + $0x1e8] sm:$0xff] }
  0x75   : > { %1063 = vmatpush.msrb.mxu2 %v998_v56 }
  0x76   : > { %516 = vmatmul.bf16.gmra.mxu0 %v1322_v7  ;;  %v1414_v7 = vor.u32 %v1557_v5, %v1411_v6  ;;  %1083 = vmatpush.msrb.mxu3 %v1014_v61  ;;  %v1011_v5 = vld [vmem:[#allocation9 + $0xc8] sm:$0xff] }
  0x77   : > { %545 = vmatmul.bf16.gmra.mxu1 %v1326_v8  ;;  %1064 = vmatpush.msrb.mxu2 %v997_v62  ;;  %v1030_v62 = vld [vmem:[#allocation9 + $0x160] sm:$0xff] }
  0x78   : > { %854 = vmatpush.bf16.msrb.mxu1 %v1414_v7  ;;  %1084 = vmatpush.msrb.mxu3 %v1013_v63 }
  0x79   : > { %1065 = vmatpush.msrb.mxu2 %v996_v0 }
  0x7a   : > { %1085 = vmatpush.msrb.mxu3 %v1012_v1 }
  0x7b   : > { %1066 = vmatpush.msrb.mxu2 %v995_v4 }
  0x7c   : > { %1086 = vmatpush.msrb.mxu3 %v1011_v5 }
  0x86   : > { %521 = vmatmul.bf16.gmra.mxu0 %v1330_v34 }
  0x87   : > { %550 = vmatmul.bf16.gmra.mxu1 %v1334_v35 }
  0xd3   : > { %v507_v8 = vpop.f32.mrf.mxu0 }
  0xd4   : > { %v536_v9 = vpop.f32.mrf.mxu1 }
  0xd5   : > { %v537_v10 = vadd.f32 %v536_v9, %v507_v8  ;;  %v994_v8 = vld [vmem:[#allocation9 + $0x40] sm:$0xff] }
  0xd6   : > { %v1010_v9 = vld [vmem:[#allocation9 + $0xc0] sm:$0xff]  ;;  %1067 = vmatpush.msrb.mxu2 %v994_v8 }
  0xd7   : > { %v556_v14 = vmax.f32 %v537_v10, 0.0  ;;  %1087 = vmatpush.msrb.mxu3 %v1010_v9  ;;  %v993_v10 = vld [vmem:[#allocation9 + $0x38] sm:$0xff] }
  0xd8   : > { %1068 = vmatpush.msrb.mxu2 %v993_v10  ;;  %v1029_v9 = vld [vmem:[#allocation9 + $0x158] sm:$0xff] }
  0xdb   : > { %v509_v11 = vpop.f32.mrf.mxu0 }
  0xdc   : > { %v538_v12 = vpop.f32.mrf.mxu1 }
  0xdd   : > { %v539_v13 = vadd.f32 %v538_v12, %v509_v11  ;;  %v1009_v11 = vld [vmem:[#allocation9 + $0xb8] sm:$0xff]  ;;  %v992_v12 = vld [vmem:[#allocation9 + $0x30] sm:$0xff] }
  0xde   : > { %1088 = vmatpush.msrb.mxu3 %v1009_v11  ;;  %1069 = vmatpush.msrb.mxu2 %v992_v12 }
  0xdf   : > { %v557_v15 = vmax.f32 %v539_v13, 0.0  ;;  %v1008_v13 = vld [vmem:[#allocation9 + $0xb0] sm:$0xff] }
  0xe0   : > { %1089 = vmatpush.msrb.mxu3 %v1008_v13 }
  0xe1   : > { %v564_v16 = vpack.c.bf16 %v557_v15, %v556_v14 }
  0xe3   : > { %768 = vmatmul.bf16.vlgmr.msra.gmra.mxu2 %v564_v16  ;;  %797 = vmatmul.bf16.vlgmr.msra.gmra.mxu3 %v564_v16  ;;  %v512_v17 = vpop.f32.mrf.mxu0 }
  0xe4   : > { %826 = vmatmul.bf16.vlgmr.msrb.gmra.mxu0 %v564_v16  ;;  %855 = vmatmul.bf16.vlgmr.msrb.gmra.mxu1 %v564_v16  ;;  %v541_v18 = vpop.f32.mrf.mxu1  ;;  %v991_v16 = vld [vmem:[#allocation9 + $0x28] sm:$0xff] }
  0xe5   : > { %v542_v19 = vadd.f32 %v541_v18, %v512_v17  ;;  %v1007_v17 = vld [vmem:[#allocation9 + $0xa8] sm:$0xff]  ;;  %1070 = vmatpush.msrb.mxu2 %v991_v16 }
  0xe6   : > { %1090 = vmatpush.msrb.mxu3 %v1007_v17  ;;  %v1028_v17 = vld [vmem:[#allocation9 + $0x150] sm:$0xff] }
  0xe7   : > { %v558_v23 = vmax.f32 %v542_v19, 0.0 }
  0xeb   : > { %v514_v20 = vpop.f32.mrf.mxu0 }
  0xec   : > { %v543_v21 = vpop.f32.mrf.mxu1 }
  0xed   : > { %v544_v22 = vadd.f32 %v543_v21, %v514_v20  ;;  %v990_v20 = vld [vmem:[#allocation9 + $0x20] sm:$0xff] }
  0xee   : > { %v1006_v21 = vld [vmem:[#allocation9 + $0xa0] sm:$0xff]  ;;  %1071 = vmatpush.msrb.mxu2 %v990_v20 }
  0xef   : > { %v559_v24 = vmax.f32 %v544_v22, 0.0  ;;  %1091 = vmatpush.msrb.mxu3 %v1006_v21  ;;  %v989_v22 = vld [vmem:[#allocation9 + $0x18] sm:$0xff] }
  0xf0   : > { %1072 = vmatpush.msrb.mxu2 %v989_v22 }
  0xf1   : > { %v565_v25 = vpack.c.bf16 %v559_v24, %v558_v23  ;;  %v1005_v23 = vld [vmem:[#allocation9 + $0x98] sm:$0xff]  ;;  %v988_v24 = vld [vmem:[#allocation9 + $0x10] sm:$0xff] }
  0xf2   : > { %1092 = vmatpush.msrb.mxu3 %v1005_v23  ;;  %1073 = vmatpush.msrb.mxu2 %v988_v24 }
  0xf3   : > { %773 = vmatmul.bf16.gmra.mxu2 %v565_v25  ;;  %802 = vmatmul.bf16.gmra.mxu3 %v565_v25  ;;  %v517_v26 = vpop.f32.mrf.mxu0 }
  0xf4   : > { %831 = vmatmul.bf16.gmra.mxu0 %v565_v25  ;;  %860 = vmatmul.bf16.gmra.mxu1 %v565_v25  ;;  %v546_v27 = vpop.f32.mrf.mxu1  ;;  %v1004_v25 = vld [vmem:[#allocation9 + $0x90] sm:$0xff] }
  0xf5   : > { %v547_v28 = vadd.f32 %v546_v27, %v517_v26  ;;  %1093 = vmatpush.msrb.mxu3 %v1004_v25 }
  0xf7   : > { %v560_v32 = vmax.f32 %v547_v28, 0.0  ;;  %v987_v28 = vld [vmem:[#allocation9 + $0x8] sm:$0xff] }
  0xf8   : > { %1074 = vmatpush.msrb.mxu2 %v987_v28 }
  0xfb   : > { %v519_v29 = vpop.f32.mrf.mxu0 }
  0xfc   : > { %v548_v30 = vpop.f32.mrf.mxu1 }
  0xfd   : > { %v549_v31 = vadd.f32 %v548_v30, %v519_v29  ;;  %v1003_v29 = vld [vmem:[#allocation9 + $0x88] sm:$0xff] }
  0xfe   : > { %1094 = vmatpush.msrb.mxu3 %v1003_v29  ;;  %v1026_v29 = vld [vmem:[#allocation9 + $0x140] sm:$0xff] }
  0xff   : > { %v561_v33 = vmax.f32 %v549_v31, 0.0 }
 0x101   : > { %v566_v34 = vpack.c.bf16 %v561_v33, %v560_v32  ;;  %v317_v32 = vlaneseq  ;;  %v986_v33 = vld [vmem:[#allocation9] sm:$0xff] }
 0x102   : > { %1075 = vmatpush.msrb.mxu2 %v986_v33 }
 0x103   : > { %778 = vmatmul.bf16.gmra.mxu2 %v566_v34  ;;  %807 = vmatmul.bf16.gmra.mxu3 %v566_v34  ;;  %v522_v35 = vpop.f32.mrf.mxu0  ;;  %vm2145_vm0 = vcmp.lt.s32.totalorder %v317_v32, 512 }
 0x104   : > { %836 = vmatmul.bf16.gmra.mxu0 %v566_v34  ;;  %865 = vmatmul.bf16.gmra.mxu1 %v566_v34  ;;  %v551_v36 = vpop.f32.mrf.mxu1  ;;  %v1002_v34 = vld [vmem:[#allocation9 + $0x80] sm:$0xff] }
 0x105   : > { %v552_v37 = vadd.f32 %v551_v36, %v522_v35  ;;  %1095 = vmatpush.msrb.mxu3 %v1002_v34  ;;  %v1033_v35 = vld [vmem:[#allocation9 + $0x178] sm:$0xff] }
 0x106   : > { %v1049_v36 = vld [vmem:[#allocation9 + $0x1f8] sm:$0xff]  ;;  %1100 = vmatpush.msra.mxu2 %v1033_v35 }
 0x107   : > { %v562_v41 = vmax.f32 %v552_v37, 0.0  ;;  %1120 = vmatpush.msra.mxu3 %v1049_v36  ;;  %v1025_v35 = vld [vmem:[#allocation9 + $0x138] sm:$0xff] }
 0x108   : > { %v1041_v36 = vld [vmem:[#allocation9 + $0x1b8] sm:$0xff] }
 0x10b   : > { %v524_v38 = vpop.f32.mrf.mxu0 }
 0x10c   : > { %v553_v39 = vpop.f32.mrf.mxu1 }
 0x10d   : > { %v554_v40 = vadd.f32 %v553_v39, %v524_v38 }
 0x10f   : > { %v563_v42 = vmax.f32 %v554_v40, 0.0  ;;  %v1913_v40 = vmov 0.0  }
 0x110   : > { %321 = vst.msk [vmem:[#allocation2] sm:$0xf] %vm2145_vm0, %v1913_v40 }
 0x111   : > { %v567_v43 = vpack.c.bf16 %v563_v42, %v562_v41  ;;  %v1032_v41 = vld [vmem:[#allocation9 + $0x170] sm:$0xff] }
 0x112   : > { %v1048_v42 = vld [vmem:[#allocation9 + $0x1f0] sm:$0xff]  ;;  %1101 = vmatpush.msra.mxu2 %v1032_v41 }
 0x113   : > { %783 = vmatmul.bf16.gmra.mxu2 %v567_v43  ;;  %812 = vmatmul.bf16.gmra.mxu3 %v567_v43 }
 0x114   : > { %841 = vmatmul.bf16.gmra.mxu0 %v567_v43  ;;  %870 = vmatmul.bf16.gmra.mxu1 %v567_v43 }
 0x115   : > { %1121 = vmatpush.msra.mxu3 %v1048_v42 }
 0x117   : > { %1122 = vmatpush.msra.mxu3 %v1047_v54 }
 0x161   : > { %v2101_v44 = vpop.f32.mrf.mxu0  ;;  %v2103_v45 = vpop.f32.mrf.mxu1 }
 0x162   : > { %v878_v43 = vmax.f32 %v2101_v44, 0.0  ;;  %v879_v46 = vmax.f32 %v2103_v45, 0.0  ;;  %v1046_v45 = vld [vmem:[#allocation9 + $0x1e0] sm:$0xff] }
 0x163   : > { %1123 = vmatpush.msra.mxu3 %v1046_v45 }
 0x166   : > { %v2105_v49 = vpop.f32.mrf.mxu2  ;;  %v2107_v50 = vpop.f32.mrf.mxu3 }
 0x167   : > { %v877_v10 = vmax.f32 %v2107_v50, 0.0 }
 0x169   : > { %v2109_v51 = vpop.f32.mrf.mxu0  ;;  %v2111_v52 = vpop.f32.mrf.mxu1 }
 0x16a   : > { %v882_v38 = vmax.f32 %v2109_v51, 0.0  ;;  %v883_v39 = vmax.f32 %v2111_v52, 0.0  ;;  %v1031_v52 = vld [vmem:[#allocation9 + $0x168] sm:$0xff] }
 0x16b   : > { %1102 = vmatpush.msra.mxu2 %v1031_v52  ;;  %v1040_v52 = vld [vmem:[#allocation9 + $0x1b0] sm:$0xff] }
 0x16c   : > { %v935_v55 = vadd.f32 %v882_v38, %v878_v43  ;;  %v948_v56 = vadd.f32 %v883_v39, %v879_v46 }
 0x16d   : > { %1103 = vmatpush.msra.mxu2 %v1030_v62  ;;  %v1023_v62 = vld [vmem:[#allocation9 + $0x128] sm:$0xff] }
 0x16e   : > { %v2113_v57 = vpop.f32.mrf.mxu2  ;;  %v2115_v58 = vpop.f32.mrf.mxu3 }
 0x16f   : > { %1104 = vmatpush.msra.mxu2 %v1029_v9 }
 0x171   : > { %v2117_v59 = vpop.f32.mrf.mxu0  ;;  %v2119_v60 = vpop.f32.mrf.mxu1  ;;  %1105 = vmatpush.msra.mxu2 %v1028_v17 }
 0x172   : > { %v886_v47 = vmax.f32 %v2117_v59, 0.0  ;;  %v887_v48 = vmax.f32 %v2119_v60, 0.0  ;;  %v880_v59 = vmax.f32 %v2113_v57, 0.0  ;;  %v881_v60 = vmax.f32 %v2115_v58, 0.0 }
 0x174   : > { %v936_v1 = vadd.f32 %v935_v55, %v886_v47  ;;  %v949_v4 = vadd.f32 %v948_v56, %v887_v48  ;;  %v922_v20 = vadd.f32 %v881_v60, %v877_v10  ;;  %v1024_v48 = vld [vmem:[#allocation9 + $0x130] sm:$0xff] }
 0x176   : > { %v2121_v2 = vpop.f32.mrf.mxu2  ;;  %v2123_v3 = vpop.f32.mrf.mxu3 }
 0x177   : > { %v884_v57 = vmax.f32 %v2121_v2, 0.0  ;;  %v885_v58 = vmax.f32 %v2123_v3, 0.0  ;;  %v1027_v2 = vld [vmem:[#allocation9 + $0x148] sm:$0xff] }
 0x178   : > { %v1043_v3 = vld [vmem:[#allocation9 + $0x1c8] sm:$0xff]  ;;  %1106 = vmatpush.msra.mxu2 %v1027_v2 }
 0x179   : > { %v2125_v6 = vpop.f32.mrf.mxu0  ;;  %v2127_v7 = vpop.f32.mrf.mxu1  ;;  %v923_v32 = vadd.f32 %v922_v20, %v885_v58 }
 0x17a   : > { %v890_v61 = vmax.f32 %v2125_v6, 0.0  ;;  %v891_v44 = vmax.f32 %v2127_v7, 0.0  ;;  %v1045_v6 = vld [vmem:[#allocation9 + $0x1d8] sm:$0xff]  ;;  %v876_v7 = vmax.f32 %v2105_v49, 0.0  ;;  %1107 = vmatpush.msra.mxu2 %v1026_v29  ;;  %v1034_v29 = vld [vmem:[#allocation9 + $0x180] sm:$0xff] }
 0x17b   : > { %1124 = vmatpush.msra.mxu3 %v1045_v6 }
 0x17c   : > { %v937_v11 = vadd.f32 %v936_v1, %v890_v61  ;;  %v950_v12 = vadd.f32 %v949_v4, %v891_v44  ;;  %1108 = vmatpush.msra.mxu2 %v1025_v35  ;;  %v1022_v4 = vld [vmem:[#allocation9 + $0x120] sm:$0xff] }
 0x17e   : > { %v2129_v14 = vpop.f32.mrf.mxu2  ;;  %v2131_v15 = vpop.f32.mrf.mxu3  ;;  %1109 = vmatpush.msra.mxu2 %v1024_v48 }
 0x17f   : > { %v888_v49 = vmax.f32 %v2129_v14, 0.0  ;;  %v889_v50 = vmax.f32 %v2131_v15, 0.0 }
 0x180   : > { %1110 = vmatpush.msra.mxu2 %v1023_v62 }
 0x181   : > { %v2133_v18 = vpop.f32.mrf.mxu0  ;;  %v2135_v19 = vpop.f32.mrf.mxu1  ;;  %v924_v39 = vadd.f32 %v923_v32, %v889_v50 }
 0x182   : > { %v894_v5 = vmax.f32 %v2133_v18, 0.0  ;;  %v895_v8 = vmax.f32 %v2135_v19, 0.0  ;;  %v1044_v18 = vld [vmem:[#allocation9 + $0x1d0] sm:$0xff]  ;;  %v909_v19 = vadd.f32 %v880_v59, %v876_v7  ;;  %1111 = vmatpush.msra.mxu2 %v1022_v4 }
 0x183   : > { %1125 = vmatpush.msra.mxu3 %v1044_v18  ;;  %v1020_v18 = vld [vmem:[#allocation9 + $0x110] sm:$0xff] }
 0x184   : > { %v938_v21 = vadd.f32 %v937_v11, %v894_v5  ;;  %v951_v22 = vadd.f32 %v950_v12, %v895_v8  ;;  %v1038_v5 = vld [vmem:[#allocation9 + $0x1a0] sm:$0xff]  ;;  %v1021_v12 = vld [vmem:[#allocation9 + $0x118] sm:$0xff] }
 0x185   : > { %1126 = vmatpush.msra.mxu3 %v1043_v3  ;;  %1112 = vmatpush.msra.mxu2 %v1021_v12  ;;  %v1019_v3 = vld [vmem:[#allocation9 + $0x108] sm:$0xff] }
 0x186   : > { %v2137_v26 = vpop.f32.mrf.mxu2  ;;  %v2139_v27 = vpop.f32.mrf.mxu3 }
 0x187   : > { %v892_v33 = vmax.f32 %v2137_v26, 0.0  ;;  %v893_v14 = vmax.f32 %v2139_v27, 0.0  ;;  %1113 = vmatpush.msra.mxu2 %v1020_v18 }
 0x189   : > { %v2141_v30 = vpop.f32.mrf.mxu0  ;;  %v2143_v31 = vpop.f32.mrf.mxu1  ;;  %v925_v55 = vadd.f32 %v924_v39, %v893_v14  ;;  %1114 = vmatpush.msra.mxu2 %v1019_v3 }
 0x18a   : > { %v898_v13 = vmax.f32 %v2141_v30, 0.0  ;;  %v899_v16 = vmax.f32 %v2143_v31, 0.0  ;;  %v1042_v30 = vld [vmem:[#allocation9 + $0x1c0] sm:$0xff]  ;;  %v910_v31 = vadd.f32 %v909_v19, %v884_v57  ;;  %v1036_v19 = vld [vmem:[#allocation9 + $0x190] sm:$0xff] }
 0x18b   : > { %1127 = vmatpush.msra.mxu3 %v1042_v30 }
 0x18c   : > { %v939_v15 = vadd.f32 %v938_v21, %v898_v13  ;;  %v952_v34 = vadd.f32 %v951_v22, %v899_v16  ;;  %v911_v38 = vadd.f32 %v910_v31, %v888_v49  ;;  %v1037_v13 = vld [vmem:[#allocation9 + $0x198] sm:$0xff]  ;;  %v1035_v21 = vld [vmem:[#allocation9 + $0x188] sm:$0xff] }
 0x18d   : > { %1128 = vmatpush.msra.mxu3 %v1041_v36 }
 0x18e   : > { %v2157_v53 = vpop.f32.mrf.mxu2  ;;  %v2159_v51 = vpop.f32.mrf.mxu3  ;;  %v912_v54 = vadd.f32 %v911_v38, %v892_v33 }
 0x18f   : > { %v896_v40 = vmax.f32 %v2157_v53, 0.0  ;;  %v897_v41 = vmax.f32 %v2159_v51, 0.0  ;;  %v1039_v51 = vld [vmem:[#allocation9 + $0x1a8] sm:$0xff]  ;;  %1129 = vmatpush.msra.mxu3 %v1040_v52 }
 0x191   : > { %v842_v63 = vpop.f32.mrf.mxu0  ;;  %v871_v0 = vpop.f32.mrf.mxu1  ;;  %v913_v45 = vadd.f32 %v912_v54, %v896_v40  ;;  %v926_v59 = vadd.f32 %v925_v55, %v897_v41  ;;  %1130 = vmatpush.msra.mxu3 %v1039_v51 }
 0x192   : > { %v902_v23 = vmax.f32 %v842_v63, 0.0  ;;  %v903_v24 = vmax.f32 %v871_v0, 0.0 }
 0x193   : > { %1131 = vmatpush.msra.mxu3 %v1038_v5 }
 0x194   : > { %v940_v46 = vadd.f32 %v939_v15, %v902_v23  ;;  %v953_v26 = vadd.f32 %v952_v34, %v903_v24 }
 0x195   : > { %1132 = vmatpush.msra.mxu3 %v1037_v13 }
 0x196   : > { %v784_v25 = vpop.f32.mrf.mxu2  ;;  %v813_v28 = vpop.f32.mrf.mxu3 }
 0x197   : > { %v900_v56 = vmax.f32 %v784_v25, 0.0  ;;  %v901_v61 = vmax.f32 %v813_v28, 0.0  ;;  %1133 = vmatpush.msra.mxu3 %v1036_v19  ;;  %v1018_v28 = vld [vmem:[#allocation9 + $0x100] sm:$0xff] }
 0x198   : > { %1115 = vmatpush.msra.mxu2 %v1018_v28 }
 0x199   : > { %v844_v42 = vpop.f32.mrf.mxu0  ;;  %v873_v43 = vpop.f32.mrf.mxu1  ;;  %v914_v8 = vadd.f32 %v913_v45, %v900_v56  ;;  %v927_v9 = vadd.f32 %v926_v59, %v901_v61  ;;  %1134 = vmatpush.msra.mxu3 %v1035_v21  ;;  %v1050_v61 = vld [vmem:[%s2227_s4] sm:$0x1] }
 0x19a   : > { %v906_v47 = vmax.f32 %v844_v42, 0.0  ;;  %v907_v27 = vmax.f32 %v873_v43, 0.0  ;;  %v908_v42 = vld [vmem:[#allocation2] sm:$0xf] }
 0x19b   : > { %1135 = vmatpush.msra.mxu3 %v1034_v29 }
 0x19c   : > { %v941_v44 = vadd.f32 %v940_v46, %v906_v47  ;;  %v954_v53 = vadd.f32 %v953_v26, %v907_v27 }
 0x19e   : > { %v942_v60 = vrot.slane %v941_v44, 4  ;;  %v955_v63 = vrot.slane %v954_v53, 4  ;;  %v786_v0 = vpop.f32.mrf.mxu2  ;;  %v815_v1 = vpop.f32.mrf.mxu3 }
 0x19f   : > { %v904_v6 = vmax.f32 %v786_v0, 0.0  ;;  %v905_v7 = vmax.f32 %v815_v1, 0.0 }
 0x1a0   : > { %v943_v10 = vadd.f32 %v942_v60, %v941_v44  ;;  %v956_v57 = vadd.f32 %v955_v63, %v954_v53 }
 0x1a1   : > { %v915_v58 = vadd.f32 %v914_v8, %v904_v6  ;;  %v928_v11 = vadd.f32 %v927_v9, %v905_v7 }
 0x1a2   : > { %v944_v16 = vrot.slane %v943_v10, 2  ;;  %v957_v17 = vrot.slane %v956_v57, 2 }
 0x1a3   : > { %v916_v20 = vrot.slane %v915_v58, 4  ;;  %v929_v49 = vrot.slane %v928_v11, 4 }
 0x1a4   : > { %v945_v50 = vadd.f32 %v944_v16, %v943_v10  ;;  %v958_v2 = vadd.f32 %v957_v17, %v956_v57 }
 0x1a5   : > { %v917_v22 = vadd.f32 %v916_v20, %v915_v58  ;;  %v930_v23 = vadd.f32 %v929_v49, %v928_v11 }
 0x1a6   : > { %v946_v24 = vrot.slane %v945_v50, 1  ;;  %v959_v25 = vrot.slane %v958_v2, 1 }
 0x1a7   : > { %v918_v30 = vrot.slane %v917_v22, 2  ;;  %v931_v31 = vrot.slane %v930_v23, 2 }
 0x1a8   : > { %v947_v32 = vadd.f32 %v946_v24, %v945_v50  ;;  %v960_v33 = vadd.f32 %v959_v25, %v958_v2 }
 0x1a9   : > { %v919_v14 = vadd.f32 %v918_v30, %v917_v22  ;;  %v932_v15 = vadd.f32 %v931_v31, %v930_v23 }
 0x1aa   : > { %v966_v36 = vrot.slane %v947_v32, 6  ;;  %v967_v38 = vrot.slane %v960_v33, 5 }
 0x1ab   : > { %v920_v34 = vrot.slane %v919_v14, 1  ;;  %v933_v35 = vrot.slane %v932_v15, 1 }
 0x1ac   : > { %v971_v43 = vsel %vm970_vm1, %v966_v36, %v967_v38 }
 0x1ad   : > { %v934_v39 = vadd.f32 %v933_v35, %v932_v15  ;;  %v921_v40 = vadd.f32 %v920_v34, %v919_v14 }
 0x1af   : > { %v965_v41 = vrot.slane %v934_v39, 7 }
 0x1b1   : > { %v969_v46 = vsel %vm968_vm2, %v921_v40, %v965_v41 }
 0x1b2   : > { %v973_v26 = vsel %vm972_vm3, %v969_v46, %v971_v43 }
 0x1b3   : > { %v975_v47 = vadd.f32 %v973_v26, %v908_v42 }
 0x1b5   : > { %980 = vst.msk [vmem:[#allocation2] sm:$0xf] %vm2145_vm0, %v975_v47 }
 0x1bc   : > { %v984_v27 = vld [vmem:[#allocation2] sm:$0xf] }
 0x1bd   : > { %v985_v48 = vmul.f32 0.015625, %v984_v27 }
 0x1bf   : > { %v1052_v52 = vperm.slane %v985_v48, 0  ;;  %v1053_v54 = vperm.slane %v985_v48, 1  ;;  %v1054_v55 = vperm.slane %v985_v48, 2  ;;  %v1055_v56 = vperm.slane %v985_v48, 3 }
 0x1c1   : > { %1076 = vmatmul.f32.vlgmr.msrb.gmra.mxu2 %v1052_v52  ;;  %1096 = vmatmul.f32.vlgmr.msrb.gmra.mxu3 %v1053_v54 }
 0x1c9   : > { %1116 = vmatmul.f32.vlgmr.msra.gmra.mxu2 %v1054_v55  ;;  %1136 = vmatmul.f32.vlgmr.msra.gmra.mxu3 %v1055_v56 }
 0x244   : > { %v1077_v44 = vpop.f32.mrf.mxu2  ;;  %v1097_v53 = vpop.f32.mrf.mxu3 }
 0x245   : > { %v1078_v37 = vadd.f32 %v1077_v44, %v1050_v61 }
 0x247   : > { %v1098_v62 = vadd.f32 %v1097_v53, %v1078_v37 }
 0x24c   : > { %v1117_v51 = vpop.f32.mrf.mxu2  ;;  %v1137_v59 = vpop.f32.mrf.mxu3 }
 0x24d   : > { %v1118_v45 = vadd.f32 %v1117_v51, %v1098_v62 }
 0x24f   : > { %v1138_v60 = vadd.f32 %v1137_v59, %v1118_v45 }
 0x251   : > { %v1140_v63 = vsub.f32 0.0, %v1138_v60 }
 0x253   : > { %v1141_v0 = vmul.f32 1.442695, %v1140_v63 }
 0x255   : > { %1688 = vpow2.f32 %v1141_v0 }
 0x25b   : > { %v1689_v1 = vpop.eup %1688 }
 0x25c   : > { %v1143_v4 = vadd.f32 1.0, %v1689_v1 }
 0x25e   : > { %1690 = vrcp.f32 %v1143_v4  ;;  %v1155_v6 = vand.u32 2147483648, %v1143_v4  ;;  %v1153_v10 = vand.u32 2147483647, %v1143_v4  ;;  %vm1149_vm5 = vweird.f32 %v1143_v4 }
 0x260   : > { %v1156_v58 = vor.u32 1.1754944e-38, %v1155_v6  ;;  %vm1154_vm7 = vcmp.eq.f32.partialorder %v1153_v10, 8.507059e+37 }
 0x264   : > { %v1691_v5 = vpop.eup %1690 }
 0x265   : > { %v1145_v8 = vmul.f32 %v1691_v5, %v1143_v4  ;;  %vm1150_vm4 = vweird.f32 %v1691_v5 }
 0x266   : > { %vm1151_vm6 = vmor %vm1149_vm5, %vm1150_vm4 }
 0x267   : > { %v1146_v9 = vsub.f32 1.0, %v1145_v8 }
 0x269   : > { %v1147_v7 = vmul.f32 %v1691_v5, %v1146_v9 }
 0x26b   : > { %v1148_v57 = vadd.f32 %v1691_v5, %v1147_v7 }
 0x26d   : > { %v1152_v11 = vsel %vm1151_vm6, %v1691_v5, %v1148_v57 }
 0x26e   : > { %v1157_v12 = vsel %vm1154_vm7, %v1156_v58, %v1152_v11 }
 0x26f   : > { %v1159_v13 = vperm.slane %v1157_v12, 0 }
 0x271   : > { %1160 = vst [vmem:[%s311_s15] sm:$0xff] %v1159_v13 }
 0x272   : > { %1839 = shalt.err (!%p1836_p0)
}
 0x273   : > { %1602 = dma.vmem_to_hbm [thread:$0]  (%p2036_p3), %s1175_s11, 128, %s1177_s24, %s1162_s21  }
 0x274 PF: > { %s1188_s14 = sand.u32 1, %s1882_s18   ;;  %p1619_p5 = pnand %p1293_p11, %p1993_p6 }
 0x275   : > { %s1189_s1 = scalar_lea.sflag [#allocation5], %s1188_s14 }
 0x276   : > { %p1620_p7 = pneg %p1619_p5 }
 0x278   : > { %1877 = dma.done.wait (%p1620_p7), %s1189_s1, 128  }
 0x279   : > { %1879 = vsyncadd (%p1620_p7), %s1189_s1, 4294967168  ;;  %s23_s23 = sadd.s32 1, %s1902_s23   ;;  %s2249_s18 = smov %s1886_s19 }
 0x27a   : > { %p20_p9 = scmp.ge.s32.totalorder %s23_s23, 4   ;;  %s2250_s19 = smov %s1890_s20 }
 0x27b   : > { %s2251_s20 = smov %s2052_s27  ;;  %s2252_s21 = smov %s1898_s22 }
 0x27c   : > { %s2253_s22 = smov %s2255_s16  ;;  %22 = sbr.rel (!%p20_p9) target bundleno = 12 (0xc), region = 105 }
 0x281   :  { %1195 = vsyncpa [#allocation4], 1 }
 0x282   :  { %1197 = vsyncpa [#allocation4 + $0x1], 1 }
 0x283   :  { %1198 = vsyncpa [#allocation7], 1 }
 0x284   :  { %1199 = vsyncpa [#allocation10], 1 }
 0x285   :  { %1200 = vsyncpa [#allocation5], 1 }
 0x286   :  { %1202 = vsyncpa [#allocation5 + $0x1], 1 }

</bundles_post_ra>
